<compile_context>
chip_gen: v7x
topology: tpu7x:2x2x1
jax: 0.10.0
libtpu: 0.0.40
codegen_flags: <defaults>
</compile_context>

<pallas_src>
import functools

import jax
import jax.numpy as jnp
from jax.experimental import pallas as pl
from jax.experimental.pallas import tpu as pltpu

_MIB = 1024 * 1024
# Conservative double-buffered tile budget: v7x has 64 MiB physical VMEM per
# TensorCore (32 MiB scoped default); v5e/v6e have 128 MiB physical.
_VMEM_BUDGET = 24 * _MIB
_VMEM_LIMIT = 32 * _MIB
# Below this many MACs the pallas_call machinery dominates; use one XLA dot.
_SMALL_PROBLEM_MACS = 1 << 21


def _round_up(x, m):
    return ((x + m - 1) // m) * m


def _maybe_cast(x, w, compute_dtype):
    if compute_dtype is not None:
        x = x.astype(compute_dtype)
        w = w.astype(compute_dtype)
    return x, w


def _fused_kernel(x_ref, w_ref, b_ref, o_ref, *, compute_dtype):
    """out tile = x(tm, K) @ w_t(K, tn) + b(1, tn); whole reduction in one dot."""
    x, w = _maybe_cast(x_ref[...], w_ref[...], compute_dtype)
    acc = jnp.dot(x, w, preferred_element_type=jnp.float32)
    o_ref[...] = (acc + b_ref[...]).astype(o_ref.dtype)


def _tiled_kernel_inplace(x_ref, w_ref, b_ref, o_ref, *, compute_dtype):
    """K-tiled GEMM accumulating directly into the resident f32 output tile."""
    k = pl.program_id(2)

    @pl.when(k == 0)
    def _():
        o_ref[...] = jnp.zeros_like(o_ref)

    x, w = _maybe_cast(x_ref[...], w_ref[...], compute_dtype)
    o_ref[...] += jnp.dot(x, w, preferred_element_type=jnp.float32)

    @pl.when(k == pl.num_programs(2) - 1)
    def _():
        o_ref[...] += b_ref[...]          # bias added exactly once


def _tiled_kernel_acc(x_ref, w_ref, b_ref, o_ref, acc_ref, *, compute_dtype):
    """K-tiled GEMM with an f32 VMEM accumulator (non-f32 output dtypes)."""
    k = pl.program_id(2)

    @pl.when(k == 0)
    def _():
        acc_ref[...] = jnp.zeros_like(acc_ref)

    x, w = _maybe_cast(x_ref[...], w_ref[...], compute_dtype)
    acc_ref[...] += jnp.dot(x, w, preferred_element_type=jnp.float32)

    @pl.when(k == pl.num_programs(2) - 1)
    def _():
        o_ref[...] = (acc_ref[...] + b_ref[...]).astype(o_ref.dtype)


def prepare_weight(weight_pt):
    """One-time re-layout of a PyTorch (output_dim, input_dim) weight to
    (input_dim, output_dim). Do this at parameter-init time, not per call."""
    return jnp.asarray(weight_pt.T)


def filter_forward(x, weight_t, bias, *, tm=None, tn=None, tk=None,
                   compute_dtype=None, force_pallas=False):
    """Filter / nn.Linear forward:  out = x @ weight_t + bias.

    x        : (M, K) activations
    weight_t : (K, N) weight in (input_dim, output_dim) layout (see
               prepare_weight) so the MXU contraction needs no transpose.
    bias     : (N,)
    compute_dtype : optional (e.g. jnp.bfloat16) MXU input dtype; accumulation
               stays f32. Gated behind this flag because it changes precision.
    """
    M, K = x.shape
    K2, N = weight_t.shape
    assert K == K2, "input_dim mismatch between x and weight"
    assert bias.shape == (N,)

    out_dtype = x.dtype
    tiles_given = not (tm is None and tn is None and tk is None)

    # --- tiny-problem fast path: one fused XLA dot beats the kernel setup ---
    if not force_pallas and not tiles_given and (M * N * K) < _SMALL_PROBLEM_MACS:
        return (jnp.dot(x, weight_t, preferred_element_type=jnp.float32)
                + bias).astype(out_dtype)

    in_bytes = jnp.dtype(x.dtype).itemsize
    out_bytes = jnp.dtype(out_dtype).itemsize
    acc_bytes = 4

    # --- tile heuristics ----------------------------------------------------
    tm_ = tm or min(512, _round_up(M, 8))        # 8-aligned M tiles
    tn_ = tn or min(512, _round_up(N, 128))      # lane-dense N tiles

    # Megacore (v7x has 2 TCs): if the default tiling gives a single (i, j)
    # tile, split N so at least one "parallel" axis has >= 2 tiles.
    if tm is None and tn is None:
        if pl.cdiv(M, tm_) == 1 and pl.cdiv(N, tn_) == 1 and N > 128:
            tn_ = max(128, _round_up(pl.cdiv(N, 2), 128))

    def _fused_footprint(tm_c, tn_c):
        return (2 * (tm_c * K + K * tn_c) * in_bytes   # double-buffered x, W
                + 2 * tm_c * tn_c * out_bytes          # double-buffered out
                + 2 * tn_c * in_bytes)                 # bias (tiny)

    def _tiled_footprint(tm_c, tn_c, tk_c):
        return (2 * (tm_c * tk_c + tk_c * tn_c) * in_bytes
                + 2 * tm_c * tn_c * max(out_bytes, acc_bytes)
                + 2 * tn_c * in_bytes)

    if tk is None and _fused_footprint(tm_, tn_) <= _VMEM_BUDGET:
        tk_ = K                                   # collapse the reduction
    else:
        tk_ = tk or min(1024, _round_up(K, 128))
        while _tiled_footprint(tm_, tn_, tk_) > _VMEM_BUDGET and tm_ > 128:
            tm_ = max(128, tm_ // 2)
        while _tiled_footprint(tm_, tn_, tk_) > _VMEM_BUDGET and tk_ > 128:
            tk_ = max(128, tk_ // 2)

    gm = pl.cdiv(M, tm_)
    gn = pl.cdiv(N, tn_)
    bias2d = bias.reshape(1, N)

    if tk_ >= K:
        # ----------------- fused path: no K grid axis, no scratch -----------
        tk_ = K
        gk = 1
        grid = (gm, gn)
        kernel = functools.partial(_fused_kernel, compute_dtype=compute_dtype)
        in_specs = [
            pl.BlockSpec((tm_, K), lambda i, j: (i, 0)),    # x tile
            pl.BlockSpec((K, tn_), lambda i, j: (0, j)),    # W_t tile (K, N)
            pl.BlockSpec((1, tn_), lambda i, j: (0, j)),    # bias tile
        ]
        out_specs = pl.BlockSpec((tm_, tn_), lambda i, j: (i, j))
        scratch_shapes = []
        dim_sem = ("parallel", "parallel")
        x_in, w_in = x, weight_t
    else:
        # ----------------- K-tiled path --------------------------------------
        Kp = _round_up(K, tk_)
        # Zero-pad only the K tail (a garbage partial K block would feed valid
        # output rows). Ragged M/N edges need no padding: Pallas masks the OOB
        # portion of the output stores.
        if Kp != K:
            x_in = jnp.pad(x, ((0, 0), (0, Kp - K)))
            w_in = jnp.pad(weight_t, ((0, Kp - K), (0, 0)))
        else:
            x_in, w_in = x, weight_t
        gk = Kp // tk_
        grid = (gm, gn, gk)
        in_specs = [
            pl.BlockSpec((tm_, tk_), lambda i, j, k: (i, k)),
            pl.BlockSpec((tk_, tn_), lambda i, j, k: (k, j)),
            pl.BlockSpec((1, tn_), lambda i, j, k: (0, j)),
        ]
        out_specs = pl.BlockSpec((tm_, tn_), lambda i, j, k: (i, j))
        dim_sem = ("parallel", "parallel", "arbitrary")
        if out_dtype == jnp.float32:
            # Accumulate directly into the resident output tile: saves the
            # tm*tn*4 scratch and the finalize copy (matters most on v5e's
            # single vector-store slot).
            kernel = functools.partial(_tiled_kernel_inplace,
                                       compute_dtype=compute_dtype)
            scratch_shapes = []
        else:
            kernel = functools.partial(_tiled_kernel_acc,
                                       compute_dtype=compute_dtype)
            scratch_shapes = [pltpu.VMEM((tm_, tn_), jnp.float32)]

    # HBM traffic including tile re-reads: x is streamed once per N-tile,
    # W once per M-tile.
    x_bytes = x.size * in_bytes
    w_bytes = weight_t.size * jnp.dtype(weight_t.dtype).itemsize
    cost = pl.CostEstimate(
        flops=2 * M * N * K,
        transcendentals=0,
        bytes_accessed=(x_bytes * gn + w_bytes * gm
                        + M * N * out_bytes
                        + N * jnp.dtype(bias.dtype).itemsize),
    )

    return pl.pallas_call(
        kernel,
        out_shape=jax.ShapeDtypeStruct((M, N), out_dtype),
        grid_spec=pltpu.PrefetchScalarGridSpec(
            num_scalar_prefetch=0,
            grid=grid,
            in_specs=in_specs,
            out_specs=out_specs,
            scratch_shapes=scratch_shapes,
        ),
        compiler_params=pltpu.CompilerParams(
            dimension_semantics=dim_sem,
            vmem_limit_bytes=_VMEM_LIMIT),
        cost_estimate=cost,
    )(x_in, w_in, bias2d)


if __name__ == "__main__":
    key = jax.random.PRNGKey(0)

    # ---- Case 1: module-sized demo (batch, input_dim) -> (batch, output_dim)
    batch, input_dim, output_dim = 8, 32, 16
    kx, kw, kb = jax.random.split(key, 3)
    bound = 1.0 / (input_dim ** 0.5)        # nn.Linear default init range
    weight = jax.random.uniform(kw, (output_dim, input_dim),
                                minval=-bound, maxval=bound, dtype=jnp.float32)
    bias = jax.random.uniform(kb, (output_dim,),
                              minval=-bound, maxval=bound, dtype=jnp.float32)
    x = jax.random.normal(kx, (batch, input_dim), dtype=jnp.float32)

    weight_t = prepare_weight(weight)       # one-time (K, N) re-layout at init

    out = jax.block_until_ready(
        filter_forward(x, weight_t, bias, force_pallas=True))
    ref = x @ weight.T + bias
    assert out.shape == (batch, output_dim)
    assert jnp.allclose(out, ref, atol=1e-5, rtol=1e-5)

    # ---- Case 2: larger multi-tile shape, fused (collapsed-K) path ----------
    M2, K2, N2 = 512, 640, 384
    kx2, kw2, kb2 = jax.random.split(jax.random.PRNGKey(1), 3)
    x2 = jax.random.normal(kx2, (M2, K2), dtype=jnp.float32)
    w2 = jax.random.normal(kw2, (N2, K2), dtype=jnp.float32) * 0.02
    b2 = jax.random.normal(kb2, (N2,), dtype=jnp.float32)
    w2_t = prepare_weight(w2)
    ref2 = x2 @ w2.T + b2

    out2 = jax.block_until_ready(filter_forward(x2, w2_t, b2))
    assert jnp.allclose(out2, ref2, atol=1e-3, rtol=1e-4)

    # ---- Case 3: force the K-tiled path (ragged K -> K-only zero pad) -------
    out3 = jax.block_until_ready(filter_forward(x2, w2_t, b2, tk=256))
    assert jnp.allclose(out3, ref2, atol=1e-3, rtol=1e-4)

    # ---- Case 4: bf16 inputs, K-tiled path with f32 VMEM accumulator --------
    M4, K4, N4 = 256, 512, 256
    kx4, kw4, kb4 = jax.random.split(jax.random.PRNGKey(2), 3)
    x4 = jax.random.normal(kx4, (M4, K4), dtype=jnp.float32).astype(jnp.bfloat16)
    w4 = (jax.random.normal(kw4, (N4, K4), dtype=jnp.float32) * 0.05
          ).astype(jnp.bfloat16)
    b4 = jax.random.normal(kb4, (N4,), dtype=jnp.float32).astype(jnp.bfloat16)
    w4_t = prepare_weight(w4)
    ref4 = (x4.astype(jnp.float32) @ w4.astype(jnp.float32).T
            + b4.astype(jnp.float32))
    out4 = jax.block_until_ready(filter_forward(x4, w4_t, b4, tk=256))
    assert jnp.allclose(out4.astype(jnp.float32), ref4, atol=5e-2, rtol=5e-2)

    # ---- Case 5: bf16 compute path on f32 data (v6e/v7x MXU peak) -----------
    out5 = jax.block_until_ready(
        filter_forward(x2, w2_t, b2, compute_dtype=jnp.bfloat16))
    assert jnp.allclose(out5, ref2, atol=3e-2, rtol=3e-2)

    print("KERNEL_OK")
</pallas_src>

<mosaic_0001>
module attributes {stable_mosaic.version = 11 : i64} {
  func.func @_fused_kernel(%arg0: i32, %arg1: i32, %arg2: memref<8x32xf32, #tpu.memory_space<vmem>>, %arg3: memref<32x128xf32, #tpu.memory_space<vmem>>, %arg4: memref<1x128xf32, #tpu.memory_space<vmem>>, %arg5: memref<8x128xf32, #tpu.memory_space<vmem>>) attributes {dimension_semantics = [#tpu.dimension_semantics<parallel>, #tpu.dimension_semantics<parallel>], iteration_bounds = array<i64: 1, 1>, scalar_prefetch = 0 : i64, scratch_operands = 0 : i64, tpu.core_type = #tpu.core_type<tc>, window_params = [{transform_indices = @transform_0, window_bounds = array<i64: 8, 32>}, {transform_indices = @transform_1, window_bounds = array<i64: 32, 128>}, {transform_indices = @transform_2, window_bounds = array<i64: 1, 128>}, {transform_indices = @transform_3, window_bounds = array<i64: 8, 128>}]} {
    %c0 = arith.constant 0 : index
    %c0_0 = arith.constant 0 : index
    %0 = vector.load %arg2[%c0, %c0_0] : memref<8x32xf32, #tpu.memory_space<vmem>>, vector<8x32xf32>
    %c0_1 = arith.constant 0 : index
    %c0_2 = arith.constant 0 : index
    %1 = vector.load %arg3[%c0_1, %c0_2] : memref<32x128xf32, #tpu.memory_space<vmem>>, vector<32x128xf32>
    %cst = arith.constant dense<0.000000e+00> : vector<8x128xf32>
    %2 = tpu.matmul %0, %1, %cst {dimension_numbers = #tpu.dot_dimension_numbers<[1], [0], [0], [1], [0, 0, 1, 1], [], []>} : vector<8x32xf32>, vector<32x128xf32>, vector<8x128xf32> -> vector<8x128xf32>
    %c0_3 = arith.constant 0 : index
    %c0_4 = arith.constant 0 : index
    %3 = vector.load %arg4[%c0_3, %c0_4] : memref<1x128xf32, #tpu.memory_space<vmem>>, vector<1x128xf32>
    %4 = vector.broadcast %3 : vector<1x128xf32> to vector<8x128xf32>
    %5 = arith.addf %2, %4 : vector<8x128xf32>
    %c0_5 = arith.constant 0 : index
    %c0_6 = arith.constant 0 : index
    %6 = vector.load %arg5[%c0_5, %c0_6] : memref<8x128xf32, #tpu.memory_space<vmem>>, vector<8x128xf32>
    tpu.vector_store %arg5[%c0_5, %c0_6], %5 {strides = array<i32>} : memref<8x128xf32, #tpu.memory_space<vmem>>, vector<8x128xf32>,
    return
  }
  func.func @transform_0(%arg0: i32, %arg1: i32) -> (i32, i32) {
    %c0_i32 = arith.constant 0 : i32
    %c0_i32_0 = arith.constant 0 : i32
    return %arg0, %c0_i32 : i32, i32
  }
  func.func @transform_1(%arg0: i32, %arg1: i32) -> (i32, i32) {
    %c0_i32 = arith.constant 0 : i32
    %c0_i32_0 = arith.constant 0 : i32
    return %c0_i32, %arg1 : i32, i32
  }
  func.func @transform_2(%arg0: i32, %arg1: i32) -> (i32, i32) {
    %c0_i32 = arith.constant 0 : i32
    %c0_i32_0 = arith.constant 0 : i32
    return %c0_i32, %arg1 : i32, i32
  }
  func.func @transform_3(%arg0: i32, %arg1: i32) -> (i32, i32) {
    %c0_i32 = arith.constant 0 : i32
    return %arg0, %arg1 : i32, i32
  }
}

</mosaic_0001>

<bundles_post_ra>
// kernel: tpu_custom_call.1
= control target key start
LH: loop header
LB: loop body
LE: loop exit
PB: predicated region body
PF: predicated region fallthrough
CT: control target
= control target key end

     0   :  { %v168_v3 = vmov 0.0|0.0   ;;  %vm169_vm0 = vmmov 0   ;;  %v170_v6 = vmov 0.0   ;;  %s222_s0 = inlined_call_operand.vmem [shape: f32[8,32], index: 0, kind: input, shape index: {}]   ;;  %s223_s1 = inlined_call_operand.vmem [shape: f32[32,16], index: 1, kind: input, shape index: {}]   ;;  %s224_s2 = inlined_call_operand.vmem [shape: f32[1,16], index: 2, kind: input, shape index: {}]   ;;  %s225_s3 = inlined_call_operand.hbm [shape: f32[8,16], index: 3, kind: output, shape index: {}]  }
   0x1   :  { %v16_v0 = vld [vmem:[%s223_s1] sm:$0xff]  ;;  %v17_v1 = vld [vmem:[%s223_s1 + $0x8] sm:$0xff]  ;;  %v18_v2 = vld [vmem:[%s223_s1 + $0x10] sm:$0xff]  ;;  %134 = vmatprep.subr.bf16.mxu0 %v168_v3  ;;  %131 = vmatprep.mubr.msk.f32.mxu0 %vm169_vm0, %v170_v6 }
   0x2   :  { %v135_v4 = vpack.c.bf16 %v17_v1, %v16_v0  ;;  %v19_v5 = vld [vmem:[%s223_s1 + $0x18] sm:$0xff] }
   0x3   :  { %8 = vsyncpa [#allocation3], 0  ;;  %v138_v7 = vpack.c.bf16 %v19_v5, %v18_v2  ;;  %v15_v8 = vld [vmem:[%s222_s0] sm:$0xff]  ;;  %vm27_vm1 = vcmask 261120   ;;  %s171_s24 = smov [#allocation2]  }
   0x4   :  { %136 = vmatpush3.bf16.msra.mxu0 %v135_v4  ;;  %v116_v9 = vld [vmem:[%s224_s2] ss:$0 sm:$0xff]  ;;  %s108_s1 = sshll.u32 %s171_s24, 4  ;;  %s109_s1 = int_to_ptr.vmem [resolvable:$true] %s108_s1 }
   0x5   :  { %137 = vmatprep.subr.bf16.mxu0 %v168_v3  ;;  %s144_s25 = scalar_lea.vmem %s109_s1, 128  ;;  %p149_p1 = scmp.lt.s32.totalorder %s109_s1, %s109_s1 }
   0x6   :  { %p145_p0 = scmp.ne.s32.totalorder %s109_s1, %s144_s25  ;;  %p150_p2 = scmp.lt.s32.totalorder %s144_s25, %s144_s25 }
   0x8   :  { %139 = vmatpush3.bf16.msra.mxu0 %v138_v7  ;;  %p151_p3 = por %p150_p2, %p149_p1 }
   0xa   :  { %p152_p4 = pnand %p151_p3, %p145_p0 }
   0xb   :  { %132 = vmatmul.mubr.msk.f32.vlgmr.msra.gmra.mrb[0].mxu0 %vm27_vm1, %v15_v8 }
  0xde   :  { %v97_v10 = vpop.f32.mrb[0].mxu0 }
  0xdf   :  { %v98_v11 = vadd.f32 %v116_v9, %v97_v10  ;;  %v133_v12 = vpop.f32.mrb[1].mxu0 }
  0xe1   :  { %101 = vst [vmem:[#allocation2] sm:$0xff] %v98_v11 }
  0xe2   :  { %155 = shalt.err (!%p152_p4)
}
  0xe3   :  { %s156_s27 = scalar_lea.hbm %s225_s3, 128 }
  0xe4   :  { %p157_p5 = scmp.ne.s32.totalorder %s225_s3, %s156_s27  ;;  %p160_p6 = scmp.lt.u32.totalorder %s156_s27, %s225_s3 }
  0xe6   :  { %p162_p7 = pnand %p160_p6, %p157_p5 }
  0xe8   :  { %165 = shalt.err (!%p162_p7)
}
  0xe9   :  { %111 = dma.vmem_to_hbm [thread:$0]  %s109_s1, 128, %s225_s3, [#allocation3]  }
  0xea   :  { %166 = dma.done.wait [#allocation3], 128  }
  0xeb   :  { %167 = vsyncadd [#allocation3], 4294967168 }
  0xec   :  { %115 = vsyncpa [#allocation3], 1 }

</bundles_post_ra>
